<compile_context>
chip_gen: v5e
topology: v5e:2x2
jax: 0.10.0
libtpu: 0.0.40
codegen_flags: <defaults>
</compile_context>

<pallas_src>
import functools

import jax
import jax.numpy as jnp
from jax import lax
from jax.experimental import pallas as pl
from jax.experimental.pallas import tpu as pltpu


def _round_up(x, m):
    return ((x + m - 1) // m) * m


def _cdiv(a, b):
    return -(-a // b)


# ---------------------------------------------------------------------------
# Kernels
# ---------------------------------------------------------------------------

def _ffn_resident_kernel(x_ref, w1_ref, b1_ref, w2_ref, b2_ref, o_ref):
    """Weight-resident fast path: 1-D grid over token row tiles.

    W1/W2/b1/b2 have constant index_maps -> fetched from HBM once and kept
    resident in VMEM across all row tiles.
      x_ref : [tm, d_model]    compute dtype
      w1_ref: [d_ff, d_model]  compute dtype (PyTorch (out, in) layout)
      b1_ref: [1, d_ff]        f32
      w2_ref: [d_model, d_ff]  compute dtype (PyTorch (out, in) layout)
      b2_ref: [1, d_model]     f32
      o_ref : [tm, d_model]
    """
    # NT contraction (both operands contract their lane dim) -> MXU-native
    # transposed weight feed; no per-step XLU transpose expected.
    h = lax.dot_general(x_ref[...], w1_ref[...], (((1,), (1,)), ((), ())),
                        preferred_element_type=jnp.float32)
    h = jnp.maximum(h + b1_ref[...], 0.0)          # bias + ReLU in f32
    # TODO(synk): dropout is identity (eval semantics); training-mode dropout would
    # use pltpu.prng_seed + pltpu.stateful_bernoulli on `h` here.
    h = h.astype(w2_ref.dtype)
    o = lax.dot_general(h, w2_ref[...], (((1,), (1,)), ((), ())),
                        preferred_element_type=jnp.float32)
    o_ref[...] = (o + b2_ref[...]).astype(o_ref.dtype)


def _ffn_chunked_kernel(x_ref, w1_ref, b1_ref, w2_ref, b2_ref, o_ref, acc_ref,
                        *, num_f):
    """Chunked fallback: 2-D grid (row tiles [parallel], d_ff chunks [arbitrary]).

      x_ref  : [tm, d_model]   (resident across the f axis)
      w1_ref : [tf, d_model]   W1 chunk
      b1_ref : [1, tf]
      w2_ref : [d_model, tf]   W2 chunk
      b2_ref : [1, d_model]
      acc_ref: [tm, d_model]   f32 accumulator scratch across the d_ff axis
    """
    f = pl.program_id(1)

    h = lax.dot_general(x_ref[...], w1_ref[...], (((1,), (1,)), ((), ())),
                        preferred_element_type=jnp.float32)
    h = jnp.maximum(h + b1_ref[...], 0.0)
    # TODO(synk): dropout is identity (eval semantics).
    h = h.astype(w2_ref.dtype)
    partial = lax.dot_general(h, w2_ref[...], (((1,), (1,)), ((), ())),
                              preferred_element_type=jnp.float32)

    if num_f == 1:
        o_ref[...] = (partial + b2_ref[...]).astype(o_ref.dtype)
    else:
        @pl.when(f == 0)
        def _():
            acc_ref[...] = partial

        @pl.when(jnp.logical_and(f > 0, f < num_f - 1))
        def _():
            acc_ref[...] += partial

        # Fused epilogue: last chunk folds its partial + b2 straight into the
        # output store (saves one [tm, d_model] f32 acc store + reload per tile).
        @pl.when(f == num_f - 1)
        def _():
            o_ref[...] = (acc_ref[...] + partial + b2_ref[...]).astype(o_ref.dtype)


# ---------------------------------------------------------------------------
# VMEM budgeting / tile selection
# ---------------------------------------------------------------------------

_DEFAULT_VMEM_CAPACITY = 64 * 1024 * 1024   # conservative (v7x per-TC size)


def _vmem_capacity_bytes():
    try:
        cap = int(pltpu.get_tpu_info().vmem_capacity_bytes)
        if cap > 0:
            return cap
    except Exception:
        pass
    return _DEFAULT_VMEM_CAPACITY


def _resident_vmem_bytes(tm, d_model, d_ff, cd_size, out_size):
    weights = 2 * d_model * d_ff * cd_size          # W1 + W2 resident (1 buffer each)
    biases = (d_ff + d_model) * 4
    x_tiles = 2 * tm * d_model * cd_size            # double-buffered input tile
    o_tiles = 2 * tm * d_model * out_size           # double-buffered output tile
    h_tmp = tm * d_ff * (4 + cd_size)               # f32 h + compute-dtype recast
    return weights + biases + x_tiles + o_tiles + h_tmp


def _chunked_vmem_bytes(tm, tf, d_model, cd_size, out_size):
    w_tiles = 2 * 2 * d_model * tf * cd_size        # W1 + W2 chunks, double-buffered
    b_tiles = 2 * tf * 4 + 2 * d_model * 4
    x_tiles = 2 * tm * d_model * cd_size
    o_tiles = 2 * tm * d_model * out_size
    acc = tm * d_model * 4
    h_tmp = tm * tf * (4 + cd_size)
    return w_tiles + b_tiles + x_tiles + o_tiles + acc + h_tmp


def _ff_chunk_candidates(d_ff):
    # Prefer big, lane-aligned chunks (v6e/v7x MXU is 256-wide, so avoid 128
    # unless d_ff forces it).
    cands = [c for c in (4096, 2048, 1024, 512, 256, 128) if d_ff % c == 0]
    if not cands:
        cands = [d_ff]   # unusual d_ff: single full chunk (still divides)
    return cands


# ---------------------------------------------------------------------------
# Wrapper
# ---------------------------------------------------------------------------

@functools.partial(jax.jit, static_argnames=("tm", "tf", "compute_dtype"))
def pointerwise_feedforward(x, w1, b1, w2, b2, *, tm=None, tf=None,
                            compute_dtype=jnp.bfloat16):
    """y = relu(x @ W1^T + b1) @ W2^T + b2   (dropout = identity / eval).

    x: [B, S, d_model]; w1: [d_ff, d_model]; w2: [d_model, d_ff] (PyTorch layout).
    """
    B, S, d_model = x.shape
    d_ff = w1.shape[0]
    tokens = B * S
    out_dtype = x.dtype

    # One-time casts at the XLA boundary (not per grid step in the kernel).
    x2d = x.reshape(tokens, d_model).astype(compute_dtype)
    w1c = w1.astype(compute_dtype)
    w2c = w2.astype(compute_dtype)
    b1_2d = b1.reshape(1, d_ff).astype(jnp.float32)
    b2_2d = b2.reshape(1, d_model).astype(jnp.float32)

    cd_size = jnp.dtype(compute_dtype).itemsize
    out_size = jnp.dtype(out_dtype).itemsize
    sublane = 8 if cd_size >= 4 else 32 // cd_size

    # Generation-aware VMEM budget: ~96 MiB on v5e/v6e, ~48 MiB on v7x.
    capacity = _vmem_capacity_bytes()
    budget = int(capacity * 0.75)

    # Row tile: at least 2 row tiles when tokens allow (keeps both v7x TCs busy),
    # capped at 1024 so re-streamed weights (if any) clear the HBM roofline.
    if tm is None:
        tm_full = _round_up(max(tokens, 1), sublane)
        tm = min(1024, _round_up(_cdiv(max(tokens, 1), 2), sublane), tm_full)
        tm = max(tm, sublane)
    else:
        tm = max(sublane, _round_up(int(tm), sublane))

    # Resident vs. chunked decision (budget-driven).
    if tf is not None:
        assert d_ff % tf == 0, "tf must divide d_ff"
        use_resident = False
        tf_sel = int(tf)
    else:
        tf_sel = None
        use_resident = _resident_vmem_bytes(tm, d_model, d_ff,
                                            cd_size, out_size) <= budget
        if not use_resident:
            # Residency (weights DMA'd once) beats a bigger row tile: shrink tm
            # (down to 256 / sublane) before falling back to chunked streaming.
            tm_try = tm
            while not use_resident and tm_try > max(sublane, 256):
                tm_try = max(sublane, _round_up(tm_try // 2, sublane))
                use_resident = _resident_vmem_bytes(tm_try, d_model, d_ff,
                                                    cd_size, out_size) <= budget
            if use_resident:
                tm = tm_try
        if not use_resident:
            # Chunked path: largest lane-aligned d_ff chunk that fits the budget.
            cands = _ff_chunk_candidates(d_ff)
            tm_try = tm
            while tf_sel is None:
                for c in cands:
                    if _chunked_vmem_bytes(tm_try, c, d_model,
                                           cd_size, out_size) <= budget:
                        tf_sel = c
                        break
                if tf_sel is None:
                    if tm_try <= sublane:
                        tf_sel = cands[-1]      # last resort: smallest chunk
                    else:
                        tm_try = max(sublane, _round_up(tm_try // 2, sublane))
            tm = tm_try

    num_row_tiles = _cdiv(tokens, tm)

    # Advisory cost estimate reflecting actual streaming.
    flops = 4 * tokens * d_model * d_ff
    x_bytes = tokens * d_model * cd_size
    out_bytes = tokens * d_model * out_size
    w_bytes = 2 * d_model * d_ff * cd_size
    bias_bytes = (d_ff + d_model) * 4
    if use_resident:
        bytes_accessed = x_bytes + out_bytes + w_bytes + bias_bytes
    else:
        bytes_accessed = x_bytes + out_bytes + num_row_tiles * (w_bytes + bias_bytes)
    cost = pl.CostEstimate(flops=flops, transcendentals=0,
                           bytes_accessed=int(bytes_accessed))

    if use_resident:
        out2d = pl.pallas_call(
            _ffn_resident_kernel,
            out_shape=jax.ShapeDtypeStruct((tokens, d_model), out_dtype),
            grid_spec=pltpu.PrefetchScalarGridSpec(
                num_scalar_prefetch=0,
                grid=(num_row_tiles,),
                in_specs=[
                    pl.BlockSpec((tm, d_model), lambda i: (i, 0)),      # x row tile
                    pl.BlockSpec((d_ff, d_model), lambda i: (0, 0)),    # W1 resident
                    pl.BlockSpec((1, d_ff), lambda i: (0, 0)),          # b1 resident
                    pl.BlockSpec((d_model, d_ff), lambda i: (0, 0)),    # W2 resident
                    pl.BlockSpec((1, d_model), lambda i: (0, 0)),       # b2 resident
                ],
                out_specs=pl.BlockSpec((tm, d_model), lambda i: (i, 0)),
            ),
            compiler_params=pltpu.CompilerParams(
                dimension_semantics=("parallel",),
                vmem_limit_bytes=budget,
            ),
            cost_estimate=cost,
        )(x2d, w1c, b1_2d, w2c, b2_2d)
    else:
        num_f = d_ff // tf_sel
        kernel = functools.partial(_ffn_chunked_kernel, num_f=num_f)
        out2d = pl.pallas_call(
            kernel,
            out_shape=jax.ShapeDtypeStruct((tokens, d_model), out_dtype),
            grid_spec=pltpu.PrefetchScalarGridSpec(
                num_scalar_prefetch=0,
                grid=(num_row_tiles, num_f),
                in_specs=[
                    pl.BlockSpec((tm, d_model), lambda i, f: (i, 0)),     # x row tile
                    pl.BlockSpec((tf_sel, d_model), lambda i, f: (f, 0)), # W1 chunk
                    pl.BlockSpec((1, tf_sel), lambda i, f: (0, f)),       # b1 chunk
                    pl.BlockSpec((d_model, tf_sel), lambda i, f: (0, f)), # W2 chunk
                    pl.BlockSpec((1, d_model), lambda i, f: (0, 0)),      # b2 resident
                ],
                out_specs=pl.BlockSpec((tm, d_model), lambda i, f: (i, 0)),
                scratch_shapes=[pltpu.VMEM((tm, d_model), jnp.float32)],
            ),
            compiler_params=pltpu.CompilerParams(
                dimension_semantics=("parallel", "arbitrary"),
                vmem_limit_bytes=budget,
            ),
            cost_estimate=cost,
        )(x2d, w1c, b1_2d, w2c, b2_2d)

    return out2d.reshape(B, S, d_model)


# ---------------------------------------------------------------------------
# Test harness
# ---------------------------------------------------------------------------

def _init_params(key, d_model, d_ff, dtype=jnp.float32):
    """Deterministic init mimicking nn.Linear shapes: W is (out, in)."""
    k1, k2, k3, k4 = jax.random.split(key, 4)
    lim1 = 1.0 / (d_model ** 0.5)
    lim2 = 1.0 / (d_ff ** 0.5)
    w1 = jax.random.uniform(k1, (d_ff, d_model), dtype, -lim1, lim1)
    b1 = jax.random.uniform(k2, (d_ff,), dtype, -lim1, lim1)
    w2 = jax.random.uniform(k3, (d_model, d_ff), dtype, -lim2, lim2)
    b2 = jax.random.uniform(k4, (d_model,), dtype, -lim2, lim2)
    return w1, b1, w2, b2


if __name__ == "__main__":
    key = jax.random.PRNGKey(0)
    kx, kp = jax.random.split(key)

    B, S = 2, 8
    d_model, d_ff = 128, 256     # lane-aligned feature dims

    x = jax.random.normal(kx, (B, S, d_model), jnp.float32)
    w1, b1, w2, b2 = _init_params(kp, d_model, d_ff)

    # Pure-JAX reference (dropout = identity in eval mode).
    ref = jnp.maximum(x @ w1.T + b1, 0.0) @ w2.T + b2

    # f32 compute path: tight check of the tiling plumbing (resident fast path).
    out_f32 = jax.block_until_ready(
        pointerwise_feedforward(x, w1, b1, w2, b2, compute_dtype=jnp.float32))
    assert out_f32.shape == (B, S, d_model)
    assert jnp.allclose(out_f32, ref, atol=1e-3, rtol=1e-3), "f32 path mismatch"

    # Default bf16 MXU path (f32 accumulation): looser tolerance.
    out_bf16 = jax.block_until_ready(
        pointerwise_feedforward(x, w1, b1, w2, b2))
    assert out_bf16.shape == (B, S, d_model)
    assert jnp.allclose(out_bf16, ref, atol=5e-2, rtol=5e-2), "bf16 path mismatch"

    # Also exercise the chunked (d_ff-streaming) fallback path explicitly.
    out_chunked = jax.block_until_ready(
        pointerwise_feedforward(x, w1, b1, w2, b2, tf=128,
                                compute_dtype=jnp.float32))
    assert jnp.allclose(out_chunked, ref, atol=1e-3, rtol=1e-3), "chunked path mismatch"

    print("KERNEL_OK")
</pallas_src>

<mosaic_0001>
module attributes {stable_mosaic.version = 11 : i64} {
  func.func @_ffn_resident_kernel(%arg0: i32, %arg1: memref<8x128xf32, #tpu.memory_space<vmem>>, %arg2: memref<256x128xf32, #tpu.memory_space<vmem>>, %arg3: memref<1x256xf32, #tpu.memory_space<vmem>>, %arg4: memref<128x256xf32, #tpu.memory_space<vmem>>, %arg5: memref<1x128xf32, #tpu.memory_space<vmem>>, %arg6: memref<8x128xf32, #tpu.memory_space<vmem>>) attributes {dimension_semantics = [#tpu.dimension_semantics<parallel>], iteration_bounds = array<i64: 2>, scalar_prefetch = 0 : i64, scratch_operands = 0 : i64, tpu.core_type = #tpu.core_type<tc>, window_params = [{transform_indices = @transform_0, window_bounds = array<i64: 8, 128>}, {pipeline_mode = #tpu.pipeline_mode<synchronous>, transform_indices = @transform_1, window_bounds = array<i64: 256, 128>}, {pipeline_mode = #tpu.pipeline_mode<synchronous>, transform_indices = @transform_2, window_bounds = array<i64: 1, 256>}, {pipeline_mode = #tpu.pipeline_mode<synchronous>, transform_indices = @transform_3, window_bounds = array<i64: 128, 256>}, {pipeline_mode = #tpu.pipeline_mode<synchronous>, transform_indices = @transform_4, window_bounds = array<i64: 1, 128>}, {transform_indices = @transform_5, window_bounds = array<i64: 8, 128>}]} {
    %c0 = arith.constant 0 : index
    %c0_0 = arith.constant 0 : index
    %0 = vector.load %arg1[%c0, %c0_0] : memref<8x128xf32, #tpu.memory_space<vmem>>, vector<8x128xf32>
    %c0_1 = arith.constant 0 : index
    %c0_2 = arith.constant 0 : index
    %1 = vector.load %arg2[%c0_1, %c0_2] : memref<256x128xf32, #tpu.memory_space<vmem>>, vector<256x128xf32>
    %cst = arith.constant dense<0.000000e+00> : vector<8x256xf32>
    %2 = tpu.matmul %0, %1, %cst {dimension_numbers = #tpu.dot_dimension_numbers<[1], [1], [0], [0], [0, 0, 1, 0], [], []>} : vector<8x128xf32>, vector<256x128xf32>, vector<8x256xf32> -> vector<8x256xf32>
    %c0_3 = arith.constant 0 : index
    %c0_4 = arith.constant 0 : index
    %3 = vector.load %arg3[%c0_3, %c0_4] : memref<1x256xf32, #tpu.memory_space<vmem>>, vector<1x256xf32>
    %4 = vector.broadcast %3 : vector<1x256xf32> to vector<8x256xf32>
    %5 = arith.addf %2, %4 : vector<8x256xf32>
    %cst_5 = arith.constant 0.000000e+00 : f32
    %6 = vector.broadcast %cst_5 : f32 to vector<8x256xf32>
    %7 = arith.maximumf %5, %6 : vector<8x256xf32>
    %c0_6 = arith.constant 0 : index
    %c0_7 = arith.constant 0 : index
    %8 = vector.load %arg4[%c0_6, %c0_7] : memref<128x256xf32, #tpu.memory_space<vmem>>, vector<128x256xf32>
    %cst_8 = arith.constant dense<0.000000e+00> : vector<8x128xf32>
    %9 = tpu.matmul %7, %8, %cst_8 {dimension_numbers = #tpu.dot_dimension_numbers<[1], [1], [0], [0], [0, 0, 1, 0], [], []>} : vector<8x256xf32>, vector<128x256xf32>, vector<8x128xf32> -> vector<8x128xf32>
    %c0_9 = arith.constant 0 : index
    %c0_10 = arith.constant 0 : index
    %10 = vector.load %arg5[%c0_9, %c0_10] : memref<1x128xf32, #tpu.memory_space<vmem>>, vector<1x128xf32>
    %11 = vector.broadcast %10 : vector<1x128xf32> to vector<8x128xf32>
    %12 = arith.addf %9, %11 : vector<8x128xf32>
    %c0_11 = arith.constant 0 : index
    %c0_12 = arith.constant 0 : index
    %13 = vector.load %arg6[%c0_11, %c0_12] : memref<8x128xf32, #tpu.memory_space<vmem>>, vector<8x128xf32>
    tpu.vector_store %arg6[%c0_11, %c0_12], %12 {strides = array<i32>} : memref<8x128xf32, #tpu.memory_space<vmem>>, vector<8x128xf32>,
    return
  }
  func.func @transform_0(%arg0: i32) -> (i32, i32) {
    %c0_i32 = arith.constant 0 : i32
    %c0_i32_0 = arith.constant 0 : i32
    return %arg0, %c0_i32 : i32, i32
  }
  func.func @transform_1(%arg0: i32) -> (i32, i32) {
    %c0_i32 = arith.constant 0 : i32
    %c0_i32_0 = arith.constant 0 : i32
    %c0_i32_1 = arith.constant 0 : i32
    return %c0_i32, %c0_i32_0 : i32, i32
  }
  func.func @transform_2(%arg0: i32) -> (i32, i32) {
    %c0_i32 = arith.constant 0 : i32
    %c0_i32_0 = arith.constant 0 : i32
    %c0_i32_1 = arith.constant 0 : i32
    return %c0_i32, %c0_i32_0 : i32, i32
  }
  func.func @transform_3(%arg0: i32) -> (i32, i32) {
    %c0_i32 = arith.constant 0 : i32
    %c0_i32_0 = arith.constant 0 : i32
    %c0_i32_1 = arith.constant 0 : i32
    return %c0_i32, %c0_i32_0 : i32, i32
  }
  func.func @transform_4(%arg0: i32) -> (i32, i32) {
    %c0_i32 = arith.constant 0 : i32
    %c0_i32_0 = arith.constant 0 : i32
    %c0_i32_1 = arith.constant 0 : i32
    return %c0_i32, %c0_i32_0 : i32, i32
  }
  func.func @transform_5(%arg0: i32) -> (i32, i32) {
    %c0_i32 = arith.constant 0 : i32
    %c0_i32_0 = arith.constant 0 : i32
    return %arg0, %c0_i32 : i32, i32
  }
}

</mosaic_0001>

<bundles_post_ra>
// kernel: pointerwise_feedforward.1
= control target key start
LH: loop header
LB: loop body
LE: loop exit
PB: predicated region body
PF: predicated region fallthrough
CT: control target
= control target key end

     0   :  { %10 = vsyncpa [#allocation3], 0  ;;  %s982_s0 = inlined_call_operand.hbm [shape: f32[16,128], index: 0, kind: input, shape index: {}]   ;;  %s983_s1 = inlined_call_operand.hbm [shape: f32[256,128], index: 1, kind: input, shape index: {}]   ;;  %s984_s2 = inlined_call_operand.vmem [shape: f32[1,256], index: 2, kind: input, shape index: {}]   ;;  %s985_s3 = inlined_call_operand.hbm [shape: f32[128,256], index: 3, kind: input, shape index: {}]   ;;  %s986_s4 = inlined_call_operand.vmem [shape: f32[1,128], index: 4, kind: input, shape index: {}]   ;;  %s987_s5 = inlined_call_operand.hbm [shape: f32[16,128], index: 5, kind: output, shape index: {}]  }
   0x1   :  { %12 = vsyncpa [#allocation3 + $0x1], 0 }
   0x2   :  { %13 = vsyncpa [#allocation6], 0 }
   0x3   :  { %14 = vsyncpa [#allocation4], 0 }
   0x4   :  { %16 = vsyncpa [#allocation4 + $0x1], 0  ;;  %s824_s18 = smov 0   ;;  %s826_s19 = smov 0  }
   0x5   :  { %s828_s20 = smov 0   ;;  %s830_s21 = smov 0  }
   0x6 LB: > { %s174_s24 = sshll.u32 %s983_s1, 4  ;;  %s848_s25 = sadd.s32 4294967295, %s786_s21   ;;  %s786_s21 = sphi %s830_s21, %s998_s21   ;;  %s782_s20 = sphi %s828_s20, %s997_s20   ;;  %s778_s19 = sphi %s826_s19, %s996_s19   ;;  %s774_s18 = sphi %s824_s18, %s995_s18   ;;  %s175_s24 = int_to_ptr.hbm [resolvable:$true] %s174_s24 }
   0x7   : > { %p539_p0 = scmp.ge.s32.totalorder %s786_s21, 1  ;;  %p43_p1 = scmp.eq.s32.totalorder %s848_s25, 0 }
   0x8   : > { %p163_p2 = scmp.lt.s32.totalorder %s786_s21, 3  ;;  %s788_s27 = smov [#allocation5]  }
   0x9   : > { %s176_s28 = sshll.u32 %s788_s27, 4  ;;  %s191_s6 = sshll.u32 %s985_s3, 4  ;;  %s177_s28 = int_to_ptr.vmem [resolvable:$true] %s176_s28  ;;  %s192_s6 = int_to_ptr.hbm [resolvable:$true] %s191_s6 }
   0xa   : > { %p853_p3 = pnand %p539_p0, %p163_p2  ;;  %s789_s7 = smov [#allocation7]  }
   0xb   : > { %s193_s8 = sshll.u32 %s789_s7, 4  ;;  %s790_s9 = smov 128   ;;  %s194_s8 = int_to_ptr.vmem [resolvable:$true] %s193_s8 }
   0xc   : > { %p566_p4 = pneg %p853_p3  ;;  %s791_s10 = smov 8  }
   0xd   : > { %s792_s11 = smov 256   ;;  %s793_s12 = smov 16  }
   0xe   : > { %p567_p6 = pnand %p566_p4, %p43_p1  ;;  %s538_s13 = sadd.s32 4294967294, %s786_s21  }
   0xf   : > { %s867_s14 = sadd.s32 1, %s786_s21   ;;  %s29_s16 = sadd.s32 1, %s782_s20 }
  0x10   : > { %569 = dma.hbm_to_vmem [thread:$0]  (!%p567_p6), %s175_s24, 4096, %s177_s28, [#allocation6], %s790_s9, %s790_s9, %s791_s10  }
  0x11   : > { %572 = dma.hbm_to_vmem [thread:$0]  (!%p567_p6), %s192_s6, 4096, %s194_s8, [#allocation6], %s792_s11, %s792_s11, %s793_s12  }
  0x12   : > { %s26_s15 = ssub.s32 %s786_s21, %s867_s14  ;;  %p36_p8 = scmp.ne.s32.totalorder %s782_s20, %s778_s19 }
  0x13   : > { %p27_p7 = scmp.eq.s32.totalorder %s26_s15, 0  ;;  %p37_p9 = scmp.eq.s32.totalorder %s786_s21, 0 }
  0x14   : > { %p42_p10 = scmp.ne.s32.totalorder %s778_s19, %s774_s18  ;;  %p150_p13 = scmp.eq.s32.totalorder %s848_s25, 1 }
  0x15   : > { %s878_s17 = scalar_select %p27_p7, %s782_s20, %s29_s16  }
  0x16   : > { %p880_p11 = por %p37_p9, %p36_p8  ;;  %p886_p12 = por %p43_p1, %p42_p10 }
  0x17   : > { %p156_p0 = scmp.eq.s32.totalorder %s538_s13, 1  ;;  %p583_p2 = scmp.lt.s32.totalorder %s786_s21, 2 }
  0x18   : > { %s210_s24 = sand.u32 1, %s782_s20   ;;  %p893_p4 = por %p150_p13, %p36_p8 }
  0x19   : > { %p897_p6 = por %p156_p0, %p42_p10  ;;  %s543_s29 = sshll.u32 %s210_s24, 3 }
  0x1a   : > { %s544_s30 = sshll.u32 %s786_s21, 3  ;;  %s214_s9 = scalar_lea.vmem [#allocation2], %s543_s29 }
  0x1b   : > { %s218_s8 = scalar_lea.hbm %s982_s0, %s544_s30  ;;  %s222_s10 = sshll.u32 %s214_s9, 4  ;;  %s223_s10 = int_to_ptr.vmem [resolvable:$true] %s222_s10 }
  0x1c   : > { %s220_s11 = sshll.u32 %s218_s8, 4  ;;  %p907_p7 = pnand %p583_p2, %p880_p11  ;;  %s221_s11 = int_to_ptr.hbm [resolvable:$true] %s220_s11 }
  0x1d   : > { %s211_s13 = scalar_lea.sflag [#allocation3], %s210_s24  ;;  %s686_s15 = sshra.s32 %s221_s11, 4  ;;  %s687_s15 = int_to_ptr.hbm [resolvable:$true] %s686_s15 }
  0x1e   : > { %s688_s16 = scalar_lea.hbm %s687_s15, 8  ;;  %p690_p9 = pneg %p907_p7 }
  0x1f   : > { %p689_p8 = scmp.ne.s32.totalorder %s687_s15, %s688_s16  ;;  %s693_s6 = scalar_lea.hbm %s982_s0, 16 }
  0x20   : > { %p694_p11 = scmp.lt.s32.totalorder %s687_s15, %s982_s0  ;;  %p695_p0 = scmp.lt.s32.totalorder %s693_s6, %s688_s16 }
  0x21   : > { %p691_p10 = pnand %p690_p9, %p689_p8 }
  0x22   : > { %p696_p2 = por %p695_p0, %p694_p11 }
  0x23   : > { %p692_p13 = pneg %p691_p10 }
  0x25   : > { %p697_p5 = pnand %p696_p2, %p692_p13 }
  0x27   : > { %700 = shalt.err (!%p697_p5)
}
  0x28   : > { %576 = dma.hbm_to_vmem [thread:$0]  (!%p907_p7), %s221_s11, 128, %s223_s10, %s211_s13  }
  0x29   : > { %231 = sbr.rel (%p853_p3) target bundleno = 382 (0x17e), region = 40  ;;  %s924_s24 = sand.u32 (!%p853_p3), 1, %s778_s19  }
  0x2a   : > { %s546_s8 = sshll.u32 (!%p853_p3), %s924_s24, 3  ;;  %s234_s9 = scalar_lea.sflag (!%p853_p3), [#allocation3], %s924_s24 }
  0x2b   : > { %s930_s15 = scalar_lea.vmem (!%p853_p3), [#allocation2], %s546_s8 }
  0x2e   : > { %761 = dma.done.wait (%p886_p12), %s234_s9, 128  }
  0x2f   : > { %763 = vsyncadd (%p886_p12), %s234_s9, 4294967168 }
  0x30   : > { %765 = dma.done.wait (%p43_p1), [#allocation6], 8192  }
  0x31   : > { %767 = vsyncadd (%p43_p1), [#allocation6], 4294959104  ;;  %v291_v0 = vld [vmem:[#allocation5 + $0x78] sm:$0xff]  ;;  %v290_v2 = vld [vmem:[#allocation5 + $0x70] sm:$0xff]  ;;  %s551_s10 = sshll.u32 %s848_s25, 3  ;;  %s274_s30 = scalar_lea.vmem [#allocation8], %s546_s8 }
  0x32   : > { %v307_v1 = vld [vmem:[#allocation5 + $0xf8] sm:$0xff]  ;;  %314 = vmatpush.xpose.msra.mxu0 %v291_v0  ;;  %v306_v3 = vld [vmem:[#allocation5 + $0xf0] sm:$0xff]  ;;  %v289_v4 = vld [vmem:[#allocation5 + $0x68] sm:$0xff]  ;;  %s444_s29 = scalar_lea.hbm %s987_s5, %s551_s10  ;;  %s446_s6 = sshll.u32 %s274_s30, 4  ;;  %s447_s6 = int_to_ptr.vmem [resolvable:$true] %s446_s6 }
  0x33   : > { %334 = vmatpush.xpose.msra.mxu1 %v307_v1  ;;  %v305_v5 = vld [vmem:[#allocation5 + $0xe8] sm:$0xff]  ;;  %v288_v6 = vld [vmem:[#allocation5 + $0x60] sm:$0xff]  ;;  %v287_v8 = vld [vmem:[#allocation5 + $0x58] sm:$0xff]  ;;  %s448_s7 = sshll.u32 %s444_s29, 4  ;;  %s434_s25 = scalar_lea.sflag [#allocation4], %s924_s24  ;;  %s449_s7 = int_to_ptr.hbm [resolvable:$true] %s448_s7 }
  0x34   : > { %v304_v7 = vld [vmem:[#allocation5 + $0xe0] sm:$0xff]  ;;  %v303_v9 = vld [vmem:[#allocation5 + $0xd8] sm:$0xff]  ;;  %v286_v10 = vld [vmem:[#allocation5 + $0x50] sm:$0xff]  ;;  %s730_s22 = sshra.s32 %s449_s7, 4  ;;  %s736_s23 = scalar_lea.hbm %s987_s5, 16  ;;  %s731_s22 = int_to_ptr.hbm [resolvable:$true] %s730_s22 }
  0x35   : > { %v302_v11 = vld [vmem:[#allocation5 + $0xd0] sm:$0xff]  ;;  %v285_v12 = vld [vmem:[#allocation5 + $0x48] sm:$0xff]  ;;  %v284_v14 = vld [vmem:[#allocation5 + $0x40] sm:$0xff]  ;;  %s732_s9 = scalar_lea.hbm %s731_s22, 8  ;;  %p737_p12 = scmp.lt.s32.totalorder %s731_s22, %s987_s5 }
  0x36   : > { %315 = vmatpush.xpose.msra.mxu0 %v290_v2  ;;  %v301_v13 = vld [vmem:[#allocation5 + $0xc8] sm:$0xff]  ;;  %v300_v15 = vld [vmem:[#allocation5 + $0xc0] sm:$0xff]  ;;  %v283_v16 = vld [vmem:[#allocation5 + $0x38] sm:$0xff]  ;;  %p733_p1 = scmp.ne.s32.totalorder %s731_s22, %s732_s9  ;;  %p738_p7 = scmp.lt.s32.totalorder %s736_s23, %s732_s9 }
  0x37   : > { %335 = vmatpush.xpose.msra.mxu1 %v306_v3  ;;  %v299_v17 = vld [vmem:[#allocation5 + $0xb8] sm:$0xff]  ;;  %v386_v18 = vld [vmem:[#allocation7 + $0xf0] sm:$0xff]  ;;  %v384_v22 = vld [vmem:[#allocation7 + $0xe0] sm:$0xff] }
  0x38   : > { %v387_v19 = vld [vmem:[#allocation7 + $0xf8] sm:$0xff]  ;;  %v282_v20 = vld [vmem:[#allocation5 + $0x30] sm:$0xff]  ;;  %392 = vmatpush.xpose.msra.mxu2 %v386_v18  ;;  %v385_v23 = vld [vmem:[#allocation7 + $0xe8] sm:$0xff]  ;;  %p734_p3 = pnand %p733_p1, %p893_p4  ;;  %p739_p8 = por %p738_p7, %p737_p12 }
  0x39   : > { %v298_v21 = vld [vmem:[#allocation5 + $0xb0] sm:$0xff]  ;;  %412 = vmatpush.xpose.msra.mxu3 %v387_v19  ;;  %v281_v24 = vld [vmem:[#allocation5 + $0x28] sm:$0xff]  ;;  %v383_v27 = vld [vmem:[#allocation7 + $0xd8] sm:$0xff] }
  0x3a   : > { %316 = vmatpush.xpose.msra.mxu0 %v289_v4  ;;  %v297_v25 = vld [vmem:[#allocation5 + $0xa8] sm:$0xff]  ;;  %v382_v26 = vld [vmem:[#allocation7 + $0xd0] sm:$0xff]  ;;  %v280_v28 = vld [vmem:[#allocation5 + $0x20] sm:$0xff]  ;;  %p735_p5 = pneg %p734_p3 }
  0x3b   : > { %336 = vmatpush.xpose.msra.mxu1 %v305_v5  ;;  %v296_v29 = vld [vmem:[#allocation5 + $0xa0] sm:$0xff]  ;;  %v381_v31 = vld [vmem:[#allocation7 + $0xc8] sm:$0xff]  ;;  %v279_v32 = vld [vmem:[#allocation5 + $0x18] sm:$0xff] }
  0x3c   : > { %393 = vmatpush.xpose.msra.mxu2 %v384_v22  ;;  %v380_v30 = vld [vmem:[#allocation7 + $0xc0] sm:$0xff]  ;;  %v295_v33 = vld [vmem:[#allocation5 + $0x98] sm:$0xff]  ;;  %v378_v34 = vld [vmem:[#allocation7 + $0xb0] sm:$0xff]  ;;  %p740_p9 = pnand %p739_p8, %p735_p5 }
  0x3d   : > { %413 = vmatpush.xpose.msra.mxu3 %v385_v23  ;;  %v379_v35 = vld [vmem:[#allocation7 + $0xb8] sm:$0xff]  ;;  %v278_v36 = vld [vmem:[#allocation5 + $0x10] sm:$0xff]  ;;  %v376_v38 = vld [vmem:[#allocation7 + $0xa0] sm:$0xff] }
  0x3e   : > { %317 = vmatpush.xpose.msra.mxu0 %v288_v6  ;;  %v294_v37 = vld [vmem:[#allocation5 + $0x90] sm:$0xff]  ;;  %v377_v39 = vld [vmem:[#allocation7 + $0xa8] sm:$0xff]  ;;  %v375_v43 = vld [vmem:[#allocation7 + $0x98] sm:$0xff] }
  0x3f   : > { %337 = vmatpush.xpose.msra.mxu1 %v304_v7  ;;  %v277_v40 = vld [vmem:[#allocation5 + $0x8] sm:$0xff]  ;;  %v374_v42 = vld [vmem:[#allocation7 + $0x90] sm:$0xff]  ;;  %v276_v44 = vld [vmem:[#allocation5] sm:$0xff] }
  0x40   : > { %394 = vmatpush.xpose.msra.mxu2 %v382_v26  ;;  %v293_v41 = vld [vmem:[#allocation5 + $0x88] sm:$0xff]  ;;  %v292_v45 = vld [vmem:[#allocation5 + $0x80] sm:$0xff]  ;;  %v275_v48 = vld [vmem:[%s930_s15] sm:$0xff] }
  0x41   : > { %414 = vmatpush.xpose.msra.mxu3 %v383_v27  ;;  %v372_v46 = vld [vmem:[#allocation7 + $0x80] sm:$0xff]  ;;  %v373_v47 = vld [vmem:[#allocation7 + $0x88] sm:$0xff]  ;;  %v370_v49 = vld [vmem:[#allocation7 + $0x70] sm:$0xff] }
  0x42   : > { %318 = vmatpush.xpose.msra.mxu0 %v287_v8  ;;  %v371_v50 = vld [vmem:[#allocation7 + $0x78] sm:$0xff]  ;;  %v368_v51 = vld [vmem:[#allocation7 + $0x60] sm:$0xff]  ;;  %v369_v52 = vld [vmem:[#allocation7 + $0x68] sm:$0xff] }
  0x43   : > { %338 = vmatpush.xpose.msra.mxu1 %v303_v9  ;;  %v366_v53 = vld [vmem:[#allocation7 + $0x50] sm:$0xff]  ;;  %v367_v54 = vld [vmem:[#allocation7 + $0x58] sm:$0xff]  ;;  %v364_v55 = vld [vmem:[#allocation7 + $0x40] sm:$0xff] }
  0x44   : > { %395 = vmatpush.xpose.msra.mxu2 %v380_v30  ;;  %v365_v56 = vld [vmem:[#allocation7 + $0x48] sm:$0xff]  ;;  %v362_v57 = vld [vmem:[#allocation7 + $0x30] sm:$0xff]  ;;  %v363_v58 = vld [vmem:[#allocation7 + $0x38] sm:$0xff] }
  0x45   : > { %415 = vmatpush.xpose.msra.mxu3 %v381_v31  ;;  %v360_v59 = vld [vmem:[#allocation7 + $0x20] sm:$0xff]  ;;  %v361_v60 = vld [vmem:[#allocation7 + $0x28] sm:$0xff]  ;;  %v358_v61 = vld [vmem:[#allocation7 + $0x10] sm:$0xff] }
  0x46   : > { %319 = vmatpush.xpose.msra.mxu0 %v286_v10  ;;  %v359_v62 = vld [vmem:[#allocation7 + $0x18] sm:$0xff]  ;;  %v356_v63 = vld [vmem:[#allocation7] sm:$0xff]  ;;  %v357_v0 = vld [vmem:[#allocation7 + $0x8] sm:$0xff] }
  0x47   : > { %339 = vmatpush.xpose.msra.mxu1 %v302_v11  ;;  %v308_v1 = vld [vmem:[%s984_s2] sm:$0x3] }
  0x48   : > { %396 = vmatpush.xpose.msra.mxu2 %v378_v34  ;;  %v310_v2 = vperm.slane %v308_v1, 0  ;;  %v311_v3 = vperm.slane %v308_v1, 1  ;;  %v625_v10 = vld [vmem:[%s986_s4] ss:$0 sm:$0xff] }
  0x49   : > { %416 = vmatpush.xpose.msra.mxu3 %v379_v35 }
  0x4a   : > { %320 = vmatpush.xpose.msra.mxu0 %v285_v12 }
  0x4b   : > { %340 = vmatpush.xpose.msra.mxu1 %v301_v13 }
  0x4c   : > { %397 = vmatpush.xpose.msra.mxu2 %v376_v38 }
  0x4d   : > { %417 = vmatpush.xpose.msra.mxu3 %v377_v39 }
  0x4e   : > { %321 = vmatpush.xpose.msra.mxu0 %v284_v14 }
  0x4f   : > { %341 = vmatpush.xpose.msra.mxu1 %v300_v15 }
  0x50   : > { %398 = vmatpush.xpose.msra.mxu2 %v374_v42 }
  0x51   : > { %418 = vmatpush.xpose.msra.mxu3 %v375_v43 }
  0x52   : > { %322 = vmatpush.xpose.msra.mxu0 %v283_v16 }
  0x53   : > { %342 = vmatpush.xpose.msra.mxu1 %v299_v17 }
  0x54   : > { %399 = vmatpush.xpose.msra.mxu2 %v372_v46 }
  0x55   : > { %419 = vmatpush.xpose.msra.mxu3 %v373_v47 }
  0x56   : > { %323 = vmatpush.xpose.msra.mxu0 %v282_v20 }
  0x57   : > { %343 = vmatpush.xpose.msra.mxu1 %v298_v21 }
  0x58   : > { %400 = vmatpush.xpose.msra.mxu2 %v370_v49 }
  0x59   : > { %420 = vmatpush.xpose.msra.mxu3 %v371_v50 }
  0x5a   : > { %324 = vmatpush.xpose.msra.mxu0 %v281_v24 }
  0x5b   : > { %344 = vmatpush.xpose.msra.mxu1 %v297_v25 }
  0x5c   : > { %401 = vmatpush.xpose.msra.mxu2 %v368_v51 }
  0x5d   : > { %421 = vmatpush.xpose.msra.mxu3 %v369_v52 }
  0x5e   : > { %325 = vmatpush.xpose.msra.mxu0 %v280_v28 }
  0x5f   : > { %345 = vmatpush.xpose.msra.mxu1 %v296_v29 }
  0x60   : > { %402 = vmatpush.xpose.msra.mxu2 %v366_v53 }
  0x61   : > { %422 = vmatpush.xpose.msra.mxu3 %v367_v54 }
  0x62   : > { %326 = vmatpush.xpose.msra.mxu0 %v279_v32 }
  0x63   : > { %346 = vmatpush.xpose.msra.mxu1 %v295_v33 }
  0x64   : > { %403 = vmatpush.xpose.msra.mxu2 %v364_v55 }
  0x65   : > { %423 = vmatpush.xpose.msra.mxu3 %v365_v56 }
  0x66   : > { %327 = vmatpush.xpose.msra.mxu0 %v278_v36 }
  0x67   : > { %347 = vmatpush.xpose.msra.mxu1 %v294_v37 }
  0x68   : > { %404 = vmatpush.xpose.msra.mxu2 %v362_v57 }
  0x69   : > { %424 = vmatpush.xpose.msra.mxu3 %v363_v58 }
  0x6a   : > { %328 = vmatpush.xpose.msra.mxu0 %v277_v40 }
  0x6b   : > { %348 = vmatpush.xpose.msra.mxu1 %v293_v41 }
  0x6c   : > { %405 = vmatpush.xpose.msra.mxu2 %v360_v59 }
  0x6d   : > { %425 = vmatpush.xpose.msra.mxu3 %v361_v60 }
  0x6e   : > { %329 = vmatpush.xpose.msra.mxu0 %v276_v44 }
  0x6f   : > { %349 = vmatpush.xpose.msra.mxu1 %v292_v45 }
  0x70   : > { %406 = vmatpush.xpose.msra.mxu2 %v358_v61 }
  0x71   : > { %330 = vmatmul.f32.vlgmr.msra.gmra.mxu0 %v275_v48  ;;  %426 = vmatpush.xpose.msra.mxu3 %v359_v62 }
  0x72   : > { %350 = vmatmul.f32.vlgmr.msra.gmra.mxu1 %v275_v48 }
  0x74   : > { %407 = vmatpush.xpose.msra.mxu2 %v356_v63 }
  0x75   : > { %427 = vmatpush.xpose.msra.mxu3 %v357_v0 }
  0xee   : > { %v331_v4 = vpop.f32.mrf.mxu0 }
  0xef   : > { %v351_v5 = vpop.f32.mrf.mxu1  ;;  %v332_v6 = vadd.f32 %v331_v4, %v310_v2 }
  0xf0   : > { %v352_v7 = vadd.f32 %v351_v5, %v311_v3 }
  0xf1   : > { %v354_v8 = vmax.f32 %v332_v6, 0.0 }
  0xf2   : > { %v355_v9 = vmax.f32 %v352_v7, 0.0 }
  0xf3   : > { %408 = vmatmul.f32.vlgmr.msra.gmra.mxu2 %v354_v8 }
  0xf4   : > { %428 = vmatmul.f32.vlgmr.msra.gmra.mxu3 %v355_v9 }
 0x176   : > { %v409_v11 = vpop.f32.mrf.mxu2 }
 0x177   : > { %v429_v12 = vpop.f32.mrf.mxu3  ;;  %v410_v13 = vadd.f32 %v625_v10, %v409_v11 }
 0x179   : > { %v430_v14 = vadd.f32 %v429_v12, %v410_v13 }
 0x17b   : > { %432 = vst [vmem:[%s274_s30] sm:$0xff] %v430_v14 }
 0x17c   : > { %743 = shalt.err (!%p740_p9)
}
 0x17d   : > { %564 = dma.vmem_to_hbm [thread:$0]  (%p893_p4), %s447_s6, 128, %s449_s7, %s434_s25  }
 0x17e PF: > { %s460_s24 = sand.u32 1, %s774_s18   ;;  %p994_p10 = scmp.ge.s32.totalorder %s786_s21, 2 }
 0x17f   : > { %s461_s11 = scalar_lea.sflag [#allocation4], %s460_s24 }
 0x180   : > { %p578_p13 = pnand %p994_p10, %p897_p6 }
 0x182   : > { %p579_p11 = pneg %p578_p13 }
 0x184   : > { %769 = dma.done.wait (%p579_p11), %s461_s11, 128  }
 0x185   : > { %771 = vsyncadd (%p579_p11), %s461_s11, 4294967168  ;;  %p19_p0 = scmp.ge.s32.totalorder %s867_s14, 4   ;;  %s995_s18 = smov %s778_s19 }
 0x186   : > { %s996_s19 = smov %s782_s20  ;;  %s997_s20 = smov %s878_s17 }
 0x187   : > { %s998_s21 = smov %s867_s14  ;;  %21 = sbr.rel (!%p19_p0) target bundleno = 6 (0x6), region = 93 }
 0x18c   :  { %467 = vsyncpa [#allocation3], 1 }
 0x18d   :  { %469 = vsyncpa [#allocation3 + $0x1], 1 }
 0x18e   :  { %470 = vsyncpa [#allocation6], 1 }
 0x18f   :  { %471 = vsyncpa [#allocation4], 1 }
 0x190   :  { %473 = vsyncpa [#allocation4 + $0x1], 1 }

</bundles_post_ra>
